<compile_context>
chip_gen: v6e
topology: v6e:2x2x1
jax: 0.10.0
libtpu: 0.0.40
codegen_flags: <defaults>
</compile_context>

<pallas_src>
import jax
import jax.numpy as jnp
from jax.experimental import pallas as pl
from jax.experimental.pallas import tpu as pltpu

LANE = 128   # TPU lane width
SUB = 8      # sublane width


def _round_up(n, m):
    return ((n + m - 1) // m) * m


def mlp_kernel(x_ref, w1_ref, b1_ref, w2_ref, b2_ref,
               w3_ref, b3_ref, w4_ref, b4_ref, o_ref):
    # Four fused Linear(+ReLU) layers on one VMEM-resident batch tile.
    # x tile is (tb, in_dim) with in_dim unpadded (K handled in-vreg by MXU).
    h = jnp.dot(x_ref[...], w1_ref[...], preferred_element_type=jnp.float32)
    h = jnp.maximum(h + b1_ref[...], 0.0)

    h = jnp.dot(h, w2_ref[...], preferred_element_type=jnp.float32)
    h = jnp.maximum(h + b2_ref[...], 0.0)

    h = jnp.dot(h, w3_ref[...], preferred_element_type=jnp.float32)
    h = jnp.maximum(h + b3_ref[...], 0.0)

    out = jnp.dot(h, w4_ref[...], preferred_element_type=jnp.float32)
    out = out + b4_ref[...]                       # (tb, 128-padded out cols)
    # Tile-aligned transpose (XLU slot), then store only the real out_dim rows
    # -> lane-dense (out_dim, tb) HBM write with no padded columns.
    out_t = out.T                                 # (128, tb)
    o_ref[...] = out_t[:o_ref.shape[0], :].astype(o_ref.dtype)


def prepare_params(params):
    """One-time padding of feature dims to 128-lane multiples (exact for a
    ReLU MLP: padded columns are zero -> relu(0)=0 -> contribute nothing).

    * w1 fan_in is left UNPADDED so x can be passed without a lane pad.
    * w4 fan_out is padded to 128 so the final in-kernel transpose is
      tile-aligned; the padded output rows are dropped before the HBM store.
    Returns (padded_arrays, real_dims). Call once, outside the hot path.
    """
    (w1, b1), (w2, b2), (w3, b3), (w4, b4) = params
    in_dim, h1 = w1.shape
    h2, h3, out_dim = w2.shape[1], w3.shape[1], w4.shape[1]
    d1, d2, d3, d4 = (_round_up(d, LANE) for d in (h1, h2, h3, out_dim))

    def padw(w, fi, fo):
        return jnp.pad(w, ((0, fi - w.shape[0]), (0, fo - w.shape[1])))

    def padb(b, fo):
        return jnp.pad(b, ((0, 0), (0, fo - b.shape[1])))

    padded = (
        padw(w1, in_dim, d1), padb(b1, d1),
        padw(w2, d1, d2),     padb(b2, d2),
        padw(w3, d2, d3),     padb(b3, d3),
        padw(w4, d3, d4),     padb(b4, d4),
    )
    return padded, (in_dim, h1, h2, h3, out_dim)


def net_forward(x, prepared, *, block_b=1024):
    """Forward pass of Net. x: (B, in_dim) f32; prepared = prepare_params(params)."""
    padded, (in_dim, h1, h2, h3, out_dim) = prepared
    B = x.shape[0]
    assert x.shape[1] == in_dim

    # Batch tile: large tiles amortize the ~0.35us/grid-step overhead; for
    # bigger batches keep >=2 grid steps (128-multiple tiles) so v7x's two
    # TensorCores both get work under dimension_semantics=("parallel",).
    Bp8 = _round_up(B, SUB)
    if Bp8 <= 2 * LANE:
        tb = Bp8                                             # single tile
    else:
        tb = min(block_b, _round_up(pl.cdiv(Bp8, 2), LANE))  # >=2 tiles
    Bp = _round_up(B, tb)
    xp = x if Bp == B else jnp.pad(x, ((0, Bp - B), (0, 0)))  # rows only

    grid = (Bp // tb,)

    # Weights/biases: full-array blocks, same block every grid step -> stay
    # VMEM-resident across the whole batch loop.
    def resident(a):
        return pl.BlockSpec(a.shape, lambda i: (0, 0))

    # Cost estimate from the REAL (unpadded) dims.
    flops = 2 * B * (in_dim * h1 + h1 * h2 + h2 * h3 + h3 * out_dim)
    bytes_accessed = 4 * (B * in_dim + B * out_dim
                          + in_dim * h1 + h1 * h2 + h2 * h3 + h3 * out_dim
                          + h1 + h2 + h3 + out_dim)

    out_t = pl.pallas_call(
        mlp_kernel,
        out_shape=jax.ShapeDtypeStruct((out_dim, Bp), jnp.float32),
        grid=grid,
        in_specs=[pl.BlockSpec((tb, in_dim), lambda i: (i, 0))]   # x: batch-tiled
                 + [resident(a) for a in padded],
        out_specs=pl.BlockSpec((out_dim, tb), lambda i: (0, i)),  # lane-dense
        compiler_params=pltpu.CompilerParams(
            dimension_semantics=("parallel",),
        ),
        cost_estimate=pl.CostEstimate(
            flops=flops, transcendentals=0, bytes_accessed=bytes_accessed),
    )(xp, *padded)

    # (out_dim, Bp) -> (B, out_dim); touches only real output bytes.
    return out_t.T[:B]


def init_linear(key, fan_in, fan_out):
    # Deterministic, PyTorch-style uniform(-1/sqrt(fan_in), 1/sqrt(fan_in)) init.
    kw, kb = jax.random.split(key)
    bound = 1.0 / jnp.sqrt(jnp.float32(fan_in))
    w = jax.random.uniform(kw, (fan_in, fan_out), jnp.float32, -bound, bound)
    b = jax.random.uniform(kb, (1, fan_out), jnp.float32, -bound, bound)
    return w, b


def reference_forward(x, params):
    (w1, b1), (w2, b2), (w3, b3), (w4, b4) = params
    h = jnp.maximum(x @ w1 + b1, 0.0)
    h = jnp.maximum(h @ w2 + b2, 0.0)
    h = jnp.maximum(h @ w3 + b3, 0.0)
    return h @ w4 + b4


if __name__ == "__main__":
    # Temperature-prediction style shapes: small feature dim, scalar output.
    # Net(in_dim=14, n_hidden_1=32, n_hidden_2=64, n_hidden_3=32, out_dim=1)
    batch, in_dim, h1, h2, h3, out_dim = 64, 14, 32, 64, 32, 1

    key = jax.random.PRNGKey(0)
    kx, k1, k2, k3, k4 = jax.random.split(key, 5)

    x = jax.random.normal(kx, (batch, in_dim), jnp.float32)
    params = (
        init_linear(k1, in_dim, h1),
        init_linear(k2, h1, h2),
        init_linear(k3, h2, h3),
        init_linear(k4, h3, out_dim),
    )

    # One-time padding outside the per-call path; per-call work is just the
    # pallas_call plus a tiny transpose/slice of the real output.
    prepared = prepare_params(params)
    fwd = jax.jit(lambda xx: net_forward(xx, prepared))

    y = jax.block_until_ready(fwd(x))

    y_ref = reference_forward(x, params)
    assert y.shape == (batch, out_dim)
    assert jnp.allclose(y, y_ref, atol=1e-5, rtol=1e-5)

    print("KERNEL_OK")
</pallas_src>

<mosaic_0001>
module attributes {stable_mosaic.version = 11 : i64} {
  func.func @mlp_kernel(%arg0: i32, %arg1: memref<64x14xf32, #tpu.memory_space<vmem>>, %arg2: memref<14x128xf32, #tpu.memory_space<vmem>>, %arg3: memref<1x128xf32, #tpu.memory_space<vmem>>, %arg4: memref<128x128xf32, #tpu.memory_space<vmem>>, %arg5: memref<1x128xf32, #tpu.memory_space<vmem>>, %arg6: memref<128x128xf32, #tpu.memory_space<vmem>>, %arg7: memref<1x128xf32, #tpu.memory_space<vmem>>, %arg8: memref<128x128xf32, #tpu.memory_space<vmem>>, %arg9: memref<1x128xf32, #tpu.memory_space<vmem>>, %arg10: memref<1x64xf32, #tpu.memory_space<vmem>>) attributes {dimension_semantics = [#tpu.dimension_semantics<parallel>], iteration_bounds = array<i64: 1>, scalar_prefetch = 0 : i64, scratch_operands = 0 : i64, tpu.core_type = #tpu.core_type<tc>, window_params = [{transform_indices = @transform_0, window_bounds = array<i64: 64, 14>}, {pipeline_mode = #tpu.pipeline_mode<synchronous>, transform_indices = @transform_1, window_bounds = array<i64: 14, 128>}, {pipeline_mode = #tpu.pipeline_mode<synchronous>, transform_indices = @transform_2, window_bounds = array<i64: 1, 128>}, {pipeline_mode = #tpu.pipeline_mode<synchronous>, transform_indices = @transform_3, window_bounds = array<i64: 128, 128>}, {pipeline_mode = #tpu.pipeline_mode<synchronous>, transform_indices = @transform_4, window_bounds = array<i64: 1, 128>}, {pipeline_mode = #tpu.pipeline_mode<synchronous>, transform_indices = @transform_5, window_bounds = array<i64: 128, 128>}, {pipeline_mode = #tpu.pipeline_mode<synchronous>, transform_indices = @transform_6, window_bounds = array<i64: 1, 128>}, {pipeline_mode = #tpu.pipeline_mode<synchronous>, transform_indices = @transform_7, window_bounds = array<i64: 128, 128>}, {pipeline_mode = #tpu.pipeline_mode<synchronous>, transform_indices = @transform_8, window_bounds = array<i64: 1, 128>}, {transform_indices = @transform_9, window_bounds = array<i64: 1, 64>}]} {
    %c0 = arith.constant 0 : index
    %c0_0 = arith.constant 0 : index
    %0 = vector.load %arg1[%c0, %c0_0] : memref<64x14xf32, #tpu.memory_space<vmem>>, vector<64x14xf32>
    %c0_1 = arith.constant 0 : index
    %c0_2 = arith.constant 0 : index
    %1 = vector.load %arg2[%c0_1, %c0_2] : memref<14x128xf32, #tpu.memory_space<vmem>>, vector<14x128xf32>
    %cst = arith.constant dense<0.000000e+00> : vector<64x128xf32>
    %2 = tpu.matmul %0, %1, %cst {dimension_numbers = #tpu.dot_dimension_numbers<[1], [0], [0], [1], [0, 0, 1, 1], [], []>} : vector<64x14xf32>, vector<14x128xf32>, vector<64x128xf32> -> vector<64x128xf32>
    %c0_3 = arith.constant 0 : index
    %c0_4 = arith.constant 0 : index
    %3 = vector.load %arg3[%c0_3, %c0_4] : memref<1x128xf32, #tpu.memory_space<vmem>>, vector<1x128xf32>
    %4 = vector.broadcast %3 : vector<1x128xf32> to vector<64x128xf32>
    %5 = arith.addf %2, %4 : vector<64x128xf32>
    %cst_5 = arith.constant 0.000000e+00 : f32
    %6 = vector.broadcast %cst_5 : f32 to vector<64x128xf32>
    %7 = arith.maximumf %5, %6 : vector<64x128xf32>
    %c0_6 = arith.constant 0 : index
    %c0_7 = arith.constant 0 : index
    %8 = vector.load %arg4[%c0_6, %c0_7] : memref<128x128xf32, #tpu.memory_space<vmem>>, vector<128x128xf32>
    %cst_8 = arith.constant dense<0.000000e+00> : vector<64x128xf32>
    %9 = tpu.matmul %7, %8, %cst_8 {dimension_numbers = #tpu.dot_dimension_numbers<[1], [0], [0], [1], [0, 0, 1, 1], [], []>} : vector<64x128xf32>, vector<128x128xf32>, vector<64x128xf32> -> vector<64x128xf32>
    %c0_9 = arith.constant 0 : index
    %c0_10 = arith.constant 0 : index
    %10 = vector.load %arg5[%c0_9, %c0_10] : memref<1x128xf32, #tpu.memory_space<vmem>>, vector<1x128xf32>
    %11 = vector.broadcast %10 : vector<1x128xf32> to vector<64x128xf32>
    %12 = arith.addf %9, %11 : vector<64x128xf32>
    %cst_11 = arith.constant 0.000000e+00 : f32
    %13 = vector.broadcast %cst_11 : f32 to vector<64x128xf32>
    %14 = arith.maximumf %12, %13 : vector<64x128xf32>
    %c0_12 = arith.constant 0 : index
    %c0_13 = arith.constant 0 : index
    %15 = vector.load %arg6[%c0_12, %c0_13] : memref<128x128xf32, #tpu.memory_space<vmem>>, vector<128x128xf32>
    %cst_14 = arith.constant dense<0.000000e+00> : vector<64x128xf32>
    %16 = tpu.matmul %14, %15, %cst_14 {dimension_numbers = #tpu.dot_dimension_numbers<[1], [0], [0], [1], [0, 0, 1, 1], [], []>} : vector<64x128xf32>, vector<128x128xf32>, vector<64x128xf32> -> vector<64x128xf32>
    %c0_15 = arith.constant 0 : index
    %c0_16 = arith.constant 0 : index
    %17 = vector.load %arg7[%c0_15, %c0_16] : memref<1x128xf32, #tpu.memory_space<vmem>>, vector<1x128xf32>
    %18 = vector.broadcast %17 : vector<1x128xf32> to vector<64x128xf32>
    %19 = arith.addf %16, %18 : vector<64x128xf32>
    %cst_17 = arith.constant 0.000000e+00 : f32
    %20 = vector.broadcast %cst_17 : f32 to vector<64x128xf32>
    %21 = arith.maximumf %19, %20 : vector<64x128xf32>
    %c0_18 = arith.constant 0 : index
    %c0_19 = arith.constant 0 : index
    %22 = vector.load %arg8[%c0_18, %c0_19] : memref<128x128xf32, #tpu.memory_space<vmem>>, vector<128x128xf32>
    %cst_20 = arith.constant dense<0.000000e+00> : vector<64x128xf32>
    %23 = tpu.matmul %21, %22, %cst_20 {dimension_numbers = #tpu.dot_dimension_numbers<[1], [0], [0], [1], [0, 0, 1, 1], [], []>} : vector<64x128xf32>, vector<128x128xf32>, vector<64x128xf32> -> vector<64x128xf32>
    %c0_21 = arith.constant 0 : index
    %c0_22 = arith.constant 0 : index
    %24 = vector.load %arg9[%c0_21, %c0_22] : memref<1x128xf32, #tpu.memory_space<vmem>>, vector<1x128xf32>
    %25 = vector.broadcast %24 : vector<1x128xf32> to vector<64x128xf32>
    %26 = arith.addf %23, %25 : vector<64x128xf32>
    %27 = tpu.transpose %26, [1, 0] : vector<64x128xf32> -> vector<128x64xf32>
    %28 = vector.extract_strided_slice %27 {offsets = [0, 0], sizes = [1, 64], strides = [1, 1]} : vector<128x64xf32> to vector<1x64xf32>
    %c0_23 = arith.constant 0 : index
    %c0_24 = arith.constant 0 : index
    %29 = vector.load %arg10[%c0_23, %c0_24] : memref<1x64xf32, #tpu.memory_space<vmem>>, vector<1x64xf32>
    tpu.vector_store %arg10[%c0_23, %c0_24], %28 {strides = array<i32>} : memref<1x64xf32, #tpu.memory_space<vmem>>, vector<1x64xf32>,
    return
  }
  func.func @transform_0(%arg0: i32) -> (i32, i32) {
    %c0_i32 = arith.constant 0 : i32
    %c0_i32_0 = arith.constant 0 : i32
    return %arg0, %c0_i32 : i32, i32
  }
  func.func @transform_1(%arg0: i32) -> (i32, i32) {
    %c0_i32 = arith.constant 0 : i32
    %c0_i32_0 = arith.constant 0 : i32
    %c0_i32_1 = arith.constant 0 : i32
    return %c0_i32, %c0_i32_0 : i32, i32
  }
  func.func @transform_2(%arg0: i32) -> (i32, i32) {
    %c0_i32 = arith.constant 0 : i32
    %c0_i32_0 = arith.constant 0 : i32
    %c0_i32_1 = arith.constant 0 : i32
    return %c0_i32, %c0_i32_0 : i32, i32
  }
  func.func @transform_3(%arg0: i32) -> (i32, i32) {
    %c0_i32 = arith.constant 0 : i32
    %c0_i32_0 = arith.constant 0 : i32
    %c0_i32_1 = arith.constant 0 : i32
    return %c0_i32, %c0_i32_0 : i32, i32
  }
  func.func @transform_4(%arg0: i32) -> (i32, i32) {
    %c0_i32 = arith.constant 0 : i32
    %c0_i32_0 = arith.constant 0 : i32
    %c0_i32_1 = arith.constant 0 : i32
    return %c0_i32, %c0_i32_0 : i32, i32
  }
  func.func @transform_5(%arg0: i32) -> (i32, i32) {
    %c0_i32 = arith.constant 0 : i32
    %c0_i32_0 = arith.constant 0 : i32
    %c0_i32_1 = arith.constant 0 : i32
    return %c0_i32, %c0_i32_0 : i32, i32
  }
  func.func @transform_6(%arg0: i32) -> (i32, i32) {
    %c0_i32 = arith.constant 0 : i32
    %c0_i32_0 = arith.constant 0 : i32
    %c0_i32_1 = arith.constant 0 : i32
    return %c0_i32, %c0_i32_0 : i32, i32
  }
  func.func @transform_7(%arg0: i32) -> (i32, i32) {
    %c0_i32 = arith.constant 0 : i32
    %c0_i32_0 = arith.constant 0 : i32
    %c0_i32_1 = arith.constant 0 : i32
    return %c0_i32, %c0_i32_0 : i32, i32
  }
  func.func @transform_8(%arg0: i32) -> (i32, i32) {
    %c0_i32 = arith.constant 0 : i32
    %c0_i32_0 = arith.constant 0 : i32
    %c0_i32_1 = arith.constant 0 : i32
    return %c0_i32, %c0_i32_0 : i32, i32
  }
  func.func @transform_9(%arg0: i32) -> (i32, i32) {
    %c0_i32 = arith.constant 0 : i32
    %c0_i32_0 = arith.constant 0 : i32
    return %c0_i32, %arg0 : i32, i32
  }
}

</mosaic_0001>

<bundles_post_ra>
// kernel: _lambda_.1
= control target key start
LH: loop header
LB: loop body
LE: loop exit
PB: predicated region body
PF: predicated region fallthrough
CT: control target
= control target key end

     0   :  { %14 = vsyncpa [#allocation3], 0  ;;  %s1187_s0 = inlined_call_operand.vmem [shape: f32[64,14], index: 0, kind: input, shape index: {}]   ;;  %s1188_s1 = inlined_call_operand.vmem [shape: f32[14,128], index: 1, kind: input, shape index: {}]   ;;  %s1189_s2 = inlined_call_operand.vmem [shape: f32[1,128], index: 2, kind: input, shape index: {}]   ;;  %s1190_s3 = inlined_call_operand.hbm [shape: f32[128,128], index: 3, kind: input, shape index: {}]   ;;  %s1191_s4 = inlined_call_operand.vmem [shape: f32[1,128], index: 4, kind: input, shape index: {}]   ;;  %s1192_s5 = inlined_call_operand.hbm [shape: f32[128,128], index: 5, kind: input, shape index: {}]   ;;  %s1193_s6 = inlined_call_operand.vmem [shape: f32[1,128], index: 6, kind: input, shape index: {}]   ;;  %s1194_s7 = inlined_call_operand.hbm [shape: f32[128,128], index: 7, kind: input, shape index: {}]   ;;  %s1195_s8 = inlined_call_operand.vmem [shape: f32[1,128], index: 8, kind: input, shape index: {}]   ;;  %s1196_s9 = inlined_call_operand.hbm [shape: f32[1,64], index: 9, kind: output, shape index: {}]  }
   0x1   :  { %15 = vsyncpa [#allocation6], 0 }
   0x2   :  { %16 = vsyncpa [#allocation4], 0  ;;  %s1051_s30 = smov [#allocation5]   ;;  %s1052_s11 = smov [#allocation2]  }
   0x3   :  { %s42_s10 = sshll.u32 %s1051_s30, 4  ;;  %s28_s12 = sshll.u32 %s1052_s11, 4  ;;  %s43_s10 = int_to_ptr.vmem [resolvable:$true] %s42_s10  ;;  %s29_s12 = int_to_ptr.vmem [resolvable:$true] %s28_s12 }
   0x4   :  { %s973_s13 = scalar_lea.vmem %s43_s10, 2048  ;;  %p978_p1 = scmp.lt.s32.totalorder %s43_s10, %s43_s10 }
   0x5   :  { %p974_p0 = scmp.ne.s32.totalorder %s43_s10, %s973_s13  ;;  %p979_p2 = scmp.lt.s32.totalorder %s973_s13, %s973_s13 }
   0x7   :  { %p980_p3 = por %p979_p2, %p978_p1 }
   0x9   :  { %p981_p4 = pnand %p980_p3, %p974_p0 }
   0xb   :  { %984 = shalt.err (!%p981_p4)
}
   0xc   :  { %s1053_s14 = smov 128   ;;  %s1054_s15 = smov 8  }
   0xd   :  { %48 = dma.hbm_to_vmem [thread:$0]  %s1192_s5, 2048, %s43_s10, [#allocation6], %s1053_s14, %s1053_s14, %s1054_s15  }
   0xe   :  { %s993_s18 = scalar_lea.vmem %s29_s12, 2048  ;;  %p998_p6 = scmp.lt.s32.totalorder %s29_s12, %s29_s12 }
   0xf   :  { %p994_p5 = scmp.ne.s32.totalorder %s29_s12, %s993_s18  ;;  %p999_p7 = scmp.lt.s32.totalorder %s993_s18, %s993_s18 }
  0x11   :  { %p1000_p8 = por %p999_p7, %p998_p6 }
  0x13   :  { %p1001_p9 = pnand %p1000_p8, %p994_p5 }
  0x15   :  { %1004 = shalt.err (!%p1001_p9)
}
  0x16   :  { %34 = dma.hbm_to_vmem [thread:$0]  %s1190_s3, 2048, %s29_s12, [#allocation3], %s1053_s14, %s1053_s14, %s1054_s15  }
  0x17   :  { %s1055_s21 = smov [#allocation7]  }
  0x18   :  { %s56_s22 = sshll.u32 %s1055_s21, 4  ;;  %s57_s22 = int_to_ptr.vmem [resolvable:$true] %s56_s22 }
  0x19   :  { %s1013_s23 = scalar_lea.vmem %s57_s22, 2048  ;;  %p1018_p11 = scmp.lt.s32.totalorder %s57_s22, %s57_s22 }
  0x1a   :  { %p1014_p10 = scmp.ne.s32.totalorder %s57_s22, %s1013_s23  ;;  %p1019_p12 = scmp.lt.s32.totalorder %s1013_s23, %s1013_s23 }
  0x1c   :  { %p1020_p13 = por %p1019_p12, %p1018_p11 }
  0x1e   :  { %p1021_p0 = pnand %p1020_p13, %p1014_p10 }
  0x20   :  { %1024 = shalt.err (!%p1021_p0)
}
  0x21   :  { %62 = dma.hbm_to_vmem [thread:$0]  %s1194_s7, 2048, %s57_s22, [#allocation6], %s1053_s14, %s1053_s14, %s1054_s15  }
  0x22   :  { %1045 = dma.done.wait [#allocation3], 2048  }
  0x23   :  { %1046 = vsyncadd [#allocation3], 4294965248 }
  0x24   :  { %1047 = dma.done.wait [#allocation6], 4096  }
  0x25   :  { %1048 = vsyncadd [#allocation6], 4294963200  ;;  %vm116_vm0 = vcmask 1045504   ;;  %vm91_vm1 = vcmask 113664   ;;  %v83_v0 = vld [vmem:[%s1188_s1 + $0x8] sm:$0x3f] }
  0x26   :  { %v82_v1 = vld [vmem:[%s1188_s1] sm:$0xff]  ;;  %778 = vmatprep.subr.msk.mxu0 %vm116_vm0, %v83_v0  ;;  %v75_v3 = vld [vmem:[%s1187_s0 + $0x8] sm:$0xff]  ;;  %v76_v4 = vld [vmem:[%s1187_s0 + $0x10] sm:$0xff]  ;;  %vm665_vm2 = vcmask 516096  }
  0x27   :  { %v74_v2 = vld [vmem:[%s1187_s0] sm:$0xff]  ;;  %779 = vmatpush3.msk.msra.mxu0 %vm116_vm0, %v83_v0  ;;  %v248_v5 = vld [vmem:[#allocation2 + $0x78] sm:$0xff]  ;;  %v247_v6 = vld [vmem:[#allocation2 + $0x70] sm:$0xff] }
  0x28   :  { %782 = vmatprep.mubr.msk.f32.mxu0 %vm91_vm1, %v74_v2  ;;  %780 = vmatprep.subr.mxu0 %v82_v1  ;;  %v246_v7 = vld [vmem:[#allocation2 + $0x68] sm:$0xff]  ;;  %v77_v8 = vld [vmem:[%s1187_s0 + $0x18] sm:$0xff]  ;;  %v78_v9 = vld [vmem:[%s1187_s0 + $0x20] sm:$0xff] }
  0x29   :  { %781 = vmatpush3.msra.mxu0 %v82_v1  ;;  %794 = vmatprep.subr.mxu1 %v248_v5  ;;  %v245_v10 = vld [vmem:[#allocation2 + $0x60] sm:$0xff]  ;;  %v244_v11 = vld [vmem:[#allocation2 + $0x58] sm:$0xff]  ;;  %v79_v12 = vld [vmem:[%s1187_s0 + $0x28] sm:$0xff] }
  0x2a   :  { %783 = vmatmul.mubr.msk.f32.vlgmr.msra.gmra.mxu0 %vm91_vm1, %v75_v3  ;;  %795 = vmatpush3.msra.mxu1 %v248_v5  ;;  %v80_v13 = vld [vmem:[%s1187_s0 + $0x30] sm:$0xff]  ;;  %v242_v15 = vld [vmem:[#allocation2 + $0x48] sm:$0xff]  ;;  %v81_v16 = vld [vmem:[%s1187_s0 + $0x38] sm:$0xff] }
  0x2b   :  { %785 = vmatprep.mubr.msk.f32.mxu0 %vm91_vm1, %v76_v4  ;;  %796 = vmatprep.subr.mxu1 %v247_v6  ;;  %v243_v14 = vld [vmem:[#allocation2 + $0x50] sm:$0xff]  ;;  %v241_v17 = vld [vmem:[#allocation2 + $0x40] sm:$0xff]  ;;  %v240_v18 = vld [vmem:[#allocation2 + $0x38] sm:$0xff] }
  0x2c   :  { %797 = vmatpush3.msra.mxu1 %v247_v6  ;;  %v239_v19 = vld [vmem:[#allocation2 + $0x30] sm:$0xff]  ;;  %v238_v20 = vld [vmem:[#allocation2 + $0x28] sm:$0xff]  ;;  %v237_v21 = vld [vmem:[#allocation2 + $0x20] sm:$0xff] }
  0x2d   :  { %798 = vmatprep.subr.mxu1 %v246_v7  ;;  %v236_v22 = vld [vmem:[#allocation2 + $0x18] sm:$0xff]  ;;  %v235_v23 = vld [vmem:[#allocation2 + $0x10] sm:$0xff]  ;;  %v234_v24 = vld [vmem:[#allocation2 + $0x8] sm:$0xff] }
  0x2e   :  { %786 = vmatmul.mubr.msk.f32.gmra.mxu0 %vm91_vm1, %v77_v8  ;;  %799 = vmatpush3.msra.mxu1 %v246_v7  ;;  %v233_v25 = vld [vmem:[#allocation2] sm:$0xff]  ;;  %v384_v26 = vld [vmem:[#allocation5 + $0x78] sm:$0xff]  ;;  %v383_v27 = vld [vmem:[#allocation5 + $0x70] sm:$0xff] }
  0x2f   :  { %788 = vmatprep.mubr.msk.f32.mxu0 %vm91_vm1, %v78_v9  ;;  %800 = vmatprep.subr.mxu1 %v245_v10  ;;  %v382_v28 = vld [vmem:[#allocation5 + $0x68] sm:$0xff]  ;;  %v381_v29 = vld [vmem:[#allocation5 + $0x60] sm:$0xff]  ;;  %v380_v30 = vld [vmem:[#allocation5 + $0x58] sm:$0xff] }
  0x30   :  { %801 = vmatpush3.msra.mxu1 %v245_v10  ;;  %838 = vmatprep.subr.mxu0 %v384_v26  ;;  %v379_v31 = vld [vmem:[#allocation5 + $0x50] sm:$0xff]  ;;  %v378_v32 = vld [vmem:[#allocation5 + $0x48] sm:$0xff]  ;;  %v377_v33 = vld [vmem:[#allocation5 + $0x40] sm:$0xff] }
  0x31   :  { %802 = vmatprep.subr.mxu1 %v244_v11  ;;  %839 = vmatpush3.msra.mxu0 %v384_v26  ;;  %v376_v34 = vld [vmem:[#allocation5 + $0x38] sm:$0xff]  ;;  %v375_v35 = vld [vmem:[#allocation5 + $0x30] sm:$0xff]  ;;  %v374_v36 = vld [vmem:[#allocation5 + $0x28] sm:$0xff] }
  0x32   :  { %789 = vmatmul.mubr.msk.f32.gmra.mxu0 %vm91_vm1, %v79_v12  ;;  %803 = vmatpush3.msra.mxu1 %v244_v11  ;;  %v373_v37 = vld [vmem:[#allocation5 + $0x20] sm:$0xff]  ;;  %v372_v63 = vld [vmem:[#allocation5 + $0x18] sm:$0xff]  ;;  %v371_v0 = vld [vmem:[#allocation5 + $0x10] sm:$0xff] }
  0x33   :  { %791 = vmatprep.mubr.msk.f32.mxu0 %vm91_vm1, %v80_v13  ;;  %804 = vmatprep.subr.mxu1 %v243_v14  ;;  %v683_v38 = vld [vmem:[%s1189_s2] ss:$0 sm:$0xff]  ;;  %v370_v1 = vld [vmem:[#allocation5 + $0x8] sm:$0xff]  ;;  %v520_v3 = vld [vmem:[#allocation7 + $0x78] sm:$0xff] }
  0x34   :  { %805 = vmatpush3.msra.mxu1 %v243_v14  ;;  %840 = vmatprep.subr.mxu0 %v383_v27  ;;  %v369_v2 = vld [vmem:[#allocation5] sm:$0xff]  ;;  %v519_v4 = vld [vmem:[#allocation7 + $0x70] sm:$0xff]  ;;  %v518_v5 = vld [vmem:[#allocation7 + $0x68] sm:$0xff] }
  0x35   :  { %806 = vmatprep.subr.mxu1 %v242_v15  ;;  %841 = vmatpush3.msra.mxu0 %v383_v27  ;;  %v517_v6 = vld [vmem:[#allocation7 + $0x60] sm:$0xff]  ;;  %v1157_v7 = vld [vmem:[#allocation7 + $0x58] sm:$0xff]  ;;  %v1160_v8 = vld [vmem:[#allocation7 + $0x50] sm:$0xff] }
  0x36   :  { %792 = vmatmul.mubr.msk.f32.gmra.mxu0 %vm91_vm1, %v81_v16  ;;  %807 = vmatpush3.msra.mxu1 %v242_v15  ;;  %v1164_v9 = vld [vmem:[#allocation7 + $0x48] sm:$0xff]  ;;  %v513_v10 = vld [vmem:[#allocation7 + $0x40] sm:$0xff]  ;;  %v512_v11 = vld [vmem:[#allocation7 + $0x38] sm:$0xff] }
  0x37   :  { %808 = vmatprep.subr.mxu1 %v241_v17  ;;  %842 = vmatprep.subr.mxu0 %v382_v28  ;;  %v511_v12 = vld [vmem:[#allocation7 + $0x30] sm:$0xff]  ;;  %v510_v13 = vld [vmem:[#allocation7 + $0x28] sm:$0xff]  ;;  %v509_v14 = vld [vmem:[#allocation7 + $0x20] sm:$0xff] }
  0x38   :  { %809 = vmatpush3.msra.mxu1 %v241_v17  ;;  %843 = vmatpush3.msra.mxu0 %v382_v28  ;;  %v693_v15 = vld [vmem:[%s1191_s4] ss:$0 sm:$0xff] }
  0x39   :  { %810 = vmatprep.subr.mxu1 %v240_v18  ;;  %844 = vmatprep.subr.mxu0 %v381_v29 }
  0x3a   :  { %811 = vmatpush3.msra.mxu1 %v240_v18  ;;  %845 = vmatpush3.msra.mxu0 %v381_v29 }
  0x3b   :  { %812 = vmatprep.subr.mxu1 %v239_v19  ;;  %846 = vmatprep.subr.mxu0 %v380_v30 }
  0x3c   :  { %813 = vmatpush3.msra.mxu1 %v239_v19  ;;  %847 = vmatpush3.msra.mxu0 %v380_v30 }
  0x3d   :  { %814 = vmatprep.subr.mxu1 %v238_v20  ;;  %848 = vmatprep.subr.mxu0 %v379_v31 }
  0x3e   :  { %815 = vmatpush3.msra.mxu1 %v238_v20  ;;  %849 = vmatpush3.msra.mxu0 %v379_v31 }
  0x3f   :  { %816 = vmatprep.subr.mxu1 %v237_v21  ;;  %850 = vmatprep.subr.mxu0 %v378_v32 }
  0x40   :  { %817 = vmatpush3.msra.mxu1 %v237_v21  ;;  %851 = vmatpush3.msra.mxu0 %v378_v32 }
  0x41   :  { %818 = vmatprep.subr.mxu1 %v236_v22  ;;  %852 = vmatprep.subr.mxu0 %v377_v33 }
  0x42   :  { %819 = vmatpush3.msra.mxu1 %v236_v22  ;;  %853 = vmatpush3.msra.mxu0 %v377_v33 }
  0x43   :  { %820 = vmatprep.subr.mxu1 %v235_v23  ;;  %854 = vmatprep.subr.mxu0 %v376_v34 }
  0x44   :  { %821 = vmatpush3.msra.mxu1 %v235_v23  ;;  %855 = vmatpush3.msra.mxu0 %v376_v34 }
  0x45   :  { %822 = vmatprep.subr.mxu1 %v234_v24  ;;  %856 = vmatprep.subr.mxu0 %v375_v35 }
  0x46   :  { %823 = vmatpush3.msra.mxu1 %v234_v24  ;;  %857 = vmatpush3.msra.mxu0 %v375_v35 }
  0x47   :  { %824 = vmatprep.subr.mxu1 %v233_v25  ;;  %858 = vmatprep.subr.mxu0 %v374_v36 }
  0x48   :  { %825 = vmatpush3.msra.mxu1 %v233_v25  ;;  %859 = vmatpush3.msra.mxu0 %v374_v36 }
  0x49   :  { %860 = vmatprep.subr.mxu0 %v373_v37  ;;  %926 = vmatprep.subr.mxu1 %v520_v3 }
  0x4a   :  { %861 = vmatpush3.msra.mxu0 %v373_v37 }
  0x4b   :  { %862 = vmatprep.subr.mxu0 %v372_v63 }
  0x4c   :  { %863 = vmatpush3.msra.mxu0 %v372_v63 }
  0x4d   :  { %864 = vmatprep.subr.mxu0 %v371_v0 }
  0x4e   :  { %865 = vmatpush3.msra.mxu0 %v371_v0 }
  0x4f   :  { %866 = vmatprep.subr.mxu0 %v370_v1 }
  0x50   :  { %867 = vmatpush3.msra.mxu0 %v370_v1 }
  0x51   :  { %868 = vmatprep.subr.mxu0 %v369_v2 }
  0x52   :  { %869 = vmatpush3.msra.mxu0 %v369_v2 }
  0x53   :  { %882 = vmatprep.subr.mxu0 %v520_v3 }
  0xea   :  { %v784_v39 = vpop.f32.mrf.mxu0 }
  0xeb   :  { %v192_v40 = vadd.f32 %v784_v39, %v683_v38 }
  0xec   :  { %v186_v41 = vpop.f32.mrf.mxu0 }
  0xed   :  { %v187_v42 = vadd.f32 %v683_v38, %v186_v41  ;;  %v226_v46 = vmax.f32 %v192_v40, 0.0  ;;  %v508_v40 = vld [vmem:[#allocation7 + $0x18] sm:$0xff]  ;;  %v507_v41 = vld [vmem:[#allocation7 + $0x10] sm:$0xff] }
  0xee   :  { %v787_v43 = vpop.f32.mrf.mxu0 }
  0xef   :  { %v202_v44 = vadd.f32 %v787_v43, %v683_v38  ;;  %v225_v45 = vmax.f32 %v187_v42, 0.0  ;;  %v506_v42 = vld [vmem:[#allocation7 + $0x8] sm:$0xff]  ;;  %v505_v43 = vld [vmem:[#allocation7] sm:$0xff] }
  0xf0   :  { %v196_v47 = vpop.f32.mrf.mxu0 }
  0xf1   :  { %v197_v48 = vadd.f32 %v683_v38, %v196_v47  ;;  %826 = vmatprep.mubr.f32.mxu1 %v225_v45  ;;  %v228_v49 = vmax.f32 %v202_v44, 0.0  ;;  %v694_v44 = vld [vmem:[%s1193_s6] ss:$0 sm:$0xff] }
  0xf2   :  { %v790_v50 = vpop.f32.mrf.mxu0  ;;  %827 = vmatmul.mubr.f32.vlgmr.msra.gmra.mxu1 %v226_v46 }
  0xf3   :  { %v227_v51 = vmax.f32 %v197_v48, 0.0  ;;  %v212_v52 = vadd.f32 %v790_v50, %v683_v38  ;;  %942 = vmatpush3.msra.mxu1 %v520_v3 }
  0xf4   :  { %v206_v53 = vpop.f32.mrf.mxu0  ;;  %927 = vmatprep.subr.mxu1 %v519_v4 }
  0xf5   :  { %v207_v54 = vadd.f32 %v683_v38, %v206_v53  ;;  %829 = vmatprep.mubr.f32.mxu1 %v227_v51  ;;  %v230_v55 = vmax.f32 %v212_v52, 0.0  ;;  %943 = vmatpush3.msra.mxu1 %v519_v4 }
  0xf6   :  { %830 = vmatmul.mubr.f32.gmra.mxu1 %v228_v49  ;;  %v793_v56 = vpop.f32.mrf.mxu0  ;;  %928 = vmatprep.subr.mxu1 %v518_v5 }
  0xf7   :  { %v229_v57 = vmax.f32 %v207_v54, 0.0  ;;  %v222_v58 = vadd.f32 %v793_v56, %v683_v38  ;;  %944 = vmatpush3.msra.mxu1 %v518_v5 }
  0xf8   :  { %v216_v59 = vpop.f32.mrf.mxu0  ;;  %929 = vmatprep.subr.mxu1 %v517_v6 }
  0xf9   :  { %v217_v60 = vadd.f32 %v683_v38, %v216_v59  ;;  %832 = vmatprep.mubr.f32.mxu1 %v229_v57  ;;  %v232_v61 = vmax.f32 %v222_v58, 0.0  ;;  %945 = vmatpush3.msra.mxu1 %v517_v6 }
  0xfa   :  { %833 = vmatmul.mubr.f32.gmra.mxu1 %v230_v55  ;;  %930 = vmatprep.subr.mxu1 %v1157_v7 }
  0xfb   :  { %v231_v62 = vmax.f32 %v217_v60, 0.0  ;;  %946 = vmatpush3.msra.mxu1 %v1157_v7 }
  0xfc   :  { %931 = vmatprep.subr.mxu1 %v1160_v8 }
  0xfd   :  { %835 = vmatprep.mubr.f32.mxu1 %v231_v62  ;;  %947 = vmatpush3.msra.mxu1 %v1160_v8 }
  0xfe   :  { %836 = vmatmul.mubr.f32.gmra.mxu1 %v232_v61  ;;  %932 = vmatprep.subr.mxu1 %v1164_v9 }
  0xff   :  { %948 = vmatpush3.msra.mxu1 %v1164_v9 }
 0x100   :  { %933 = vmatprep.subr.mxu1 %v513_v10 }
 0x101   :  { %949 = vmatpush3.msra.mxu1 %v513_v10 }
 0x102   :  { %934 = vmatprep.subr.mxu1 %v512_v11 }
 0x103   :  { %950 = vmatpush3.msra.mxu1 %v512_v11 }
 0x104   :  { %935 = vmatprep.subr.mxu1 %v511_v12 }
 0x105   :  { %951 = vmatpush3.msra.mxu1 %v511_v12 }
 0x106   :  { %936 = vmatprep.subr.mxu1 %v510_v13 }
 0x107   :  { %952 = vmatpush3.msra.mxu1 %v510_v13 }
 0x108   :  { %937 = vmatprep.subr.mxu1 %v509_v14 }
 0x109   :  { %953 = vmatpush3.msra.mxu1 %v509_v14 }
 0x10a   :  { %938 = vmatprep.subr.mxu1 %v508_v40 }
 0x10b   :  { %954 = vmatpush3.msra.mxu1 %v508_v40 }
 0x10c   :  { %939 = vmatprep.subr.mxu1 %v507_v41 }
 0x10d   :  { %955 = vmatpush3.msra.mxu1 %v507_v41 }
 0x10e   :  { %940 = vmatprep.subr.mxu1 %v506_v42 }
 0x10f   :  { %956 = vmatpush3.msra.mxu1 %v506_v42 }
 0x110   :  { %941 = vmatprep.subr.mxu1 %v505_v43 }
 0x111   :  { %957 = vmatpush3.msra.mxu1 %v505_v43 }
 0x1b2   :  { %v828_v16 = vpop.f32.mrf.mxu1 }
 0x1b3   :  { %v328_v17 = vadd.f32 %v828_v16, %v693_v15 }
 0x1b4   :  { %v322_v18 = vpop.f32.mrf.mxu1 }
 0x1b5   :  { %v323_v19 = vadd.f32 %v693_v15, %v322_v18  ;;  %v362_v22 = vmax.f32 %v328_v17, 0.0 }
 0x1b6   :  { %v831_v20 = vpop.f32.mrf.mxu1 }
 0x1b7   :  { %v361_v21 = vmax.f32 %v323_v19, 0.0  ;;  %v338_v23 = vadd.f32 %v831_v20, %v693_v15 }
 0x1b8   :  { %v332_v24 = vpop.f32.mrf.mxu1 }
 0x1b9   :  { %v333_v25 = vadd.f32 %v693_v15, %v332_v24  ;;  %870 = vmatprep.mubr.f32.mxu0 %v361_v21  ;;  %v364_v29 = vmax.f32 %v338_v23, 0.0 }
 0x1ba   :  { %v834_v26 = vpop.f32.mrf.mxu1  ;;  %871 = vmatmul.mubr.f32.vlgmr.msra.gmra.mxu0 %v362_v22 }
 0x1bb   :  { %v363_v27 = vmax.f32 %v333_v25, 0.0  ;;  %v348_v28 = vadd.f32 %v834_v26, %v693_v15  ;;  %883 = vmatpush3.msra.mxu0 %v520_v3 }
 0x1bc   :  { %v342_v30 = vpop.f32.mrf.mxu1  ;;  %884 = vmatprep.subr.mxu0 %v519_v4 }
 0x1bd   :  { %v343_v31 = vadd.f32 %v693_v15, %v342_v30  ;;  %873 = vmatprep.mubr.f32.mxu0 %v363_v27  ;;  %885 = vmatpush3.msra.mxu0 %v519_v4  ;;  %v366_v32 = vmax.f32 %v348_v28, 0.0 }
 0x1be   :  { %874 = vmatmul.mubr.f32.gmra.mxu0 %v364_v29  ;;  %v837_v33 = vpop.f32.mrf.mxu1  ;;  %886 = vmatprep.subr.mxu0 %v518_v5 }
 0x1bf   :  { %v365_v34 = vmax.f32 %v343_v31, 0.0  ;;  %v358_v35 = vadd.f32 %v837_v33, %v693_v15  ;;  %887 = vmatpush3.msra.mxu0 %v518_v5 }
 0x1c0   :  { %v352_v36 = vpop.f32.mrf.mxu1  ;;  %888 = vmatprep.subr.mxu0 %v517_v6 }
 0x1c1   :  { %v353_v37 = vadd.f32 %v693_v15, %v352_v36  ;;  %876 = vmatprep.mubr.f32.mxu0 %v365_v34  ;;  %889 = vmatpush3.msra.mxu0 %v517_v6  ;;  %v368_v38 = vmax.f32 %v358_v35, 0.0  ;;  %v695_v6 = vld [vmem:[%s1195_s8] ss:$0 sm:$0xff]  ;;  %s1056_s8 = smov [#allocation8]  }
 0x1c2   :  { %877 = vmatmul.mubr.f32.gmra.mxu0 %v366_v32  ;;  %890 = vmatprep.subr.mxu0 %v1157_v7  ;;  %s673_s24 = sshll.u32 %s1056_s8, 4  ;;  %s674_s24 = int_to_ptr.vmem [resolvable:$true] %s673_s24 }
 0x1c3   :  { %v367_v39 = vmax.f32 %v353_v37, 0.0  ;;  %891 = vmatpush3.msra.mxu0 %v1157_v7  ;;  %s1025_s3 = scalar_lea.vmem %s674_s24, 16  ;;  %s1029_s25 = scalar_lea.vmem %s674_s24, 32 }
 0x1c4   :  { %892 = vmatprep.subr.mxu0 %v1160_v8  ;;  %p1026_p1 = scmp.ne.s32.totalorder %s674_s24, %s1025_s3  ;;  %p1030_p2 = scmp.lt.s32.totalorder %s674_s24, %s674_s24 }
 0x1c5   :  { %879 = vmatprep.mubr.f32.mxu0 %v367_v39  ;;  %893 = vmatpush3.msra.mxu0 %v1160_v8  ;;  %p1031_p3 = scmp.lt.s32.totalorder %s1029_s25, %s1025_s3 }
 0x1c6   :  { %880 = vmatmul.mubr.f32.gmra.mxu0 %v368_v38  ;;  %894 = vmatprep.subr.mxu0 %v1164_v9 }
 0x1c7   :  { %895 = vmatpush3.msra.mxu0 %v1164_v9  ;;  %p1032_p4 = por %p1031_p3, %p1030_p2 }
 0x1c8   :  { %896 = vmatprep.subr.mxu0 %v513_v10 }
 0x1c9   :  { %897 = vmatpush3.msra.mxu0 %v513_v10  ;;  %p1033_p5 = pnand %p1032_p4, %p1026_p1 }
 0x1ca   :  { %898 = vmatprep.subr.mxu0 %v512_v11 }
 0x1cb   :  { %899 = vmatpush3.msra.mxu0 %v512_v11 }
 0x1cc   :  { %900 = vmatprep.subr.mxu0 %v511_v12 }
 0x1cd   :  { %901 = vmatpush3.msra.mxu0 %v511_v12 }
 0x1ce   :  { %902 = vmatprep.subr.mxu0 %v510_v13 }
 0x1cf   :  { %903 = vmatpush3.msra.mxu0 %v510_v13 }
 0x1d0   :  { %904 = vmatprep.subr.mxu0 %v509_v14 }
 0x1d1   :  { %905 = vmatpush3.msra.mxu0 %v509_v14 }
 0x1d2   :  { %906 = vmatprep.subr.mxu0 %v508_v40 }
 0x1d3   :  { %907 = vmatpush3.msra.mxu0 %v508_v40 }
 0x1d4   :  { %908 = vmatprep.subr.mxu0 %v507_v41 }
 0x1d5   :  { %909 = vmatpush3.msra.mxu0 %v507_v41 }
 0x1d6   :  { %910 = vmatprep.subr.mxu0 %v506_v42 }
 0x1d7   :  { %911 = vmatpush3.msra.mxu0 %v506_v42 }
 0x1d8   :  { %912 = vmatprep.subr.mxu0 %v505_v43 }
 0x1d9   :  { %913 = vmatpush3.msra.mxu0 %v505_v43 }
 0x27a   :  { %v872_v45 = vpop.f32.mrf.mxu0 }
 0x27b   :  { %v464_v46 = vadd.f32 %v872_v45, %v694_v44 }
 0x27c   :  { %v458_v47 = vpop.f32.mrf.mxu0 }
 0x27d   :  { %v459_v48 = vadd.f32 %v694_v44, %v458_v47  ;;  %v498_v51 = vmax.f32 %v464_v46, 0.0 }
 0x27e   :  { %v875_v49 = vpop.f32.mrf.mxu0 }
 0x27f   :  { %v497_v50 = vmax.f32 %v459_v48, 0.0  ;;  %v474_v52 = vadd.f32 %v875_v49, %v694_v44 }
 0x280   :  { %v468_v53 = vpop.f32.mrf.mxu0 }
 0x281   :  { %v469_v54 = vadd.f32 %v694_v44, %v468_v53  ;;  %914 = vmatprep.mubr.f32.mxu0 %v497_v50  ;;  %v500_v58 = vmax.f32 %v474_v52, 0.0 }
 0x282   :  { %v878_v55 = vpop.f32.mrf.mxu0  ;;  %915 = vmatmul.mubr.f32.vlgmr.msra.gmra.mxu0 %v498_v51 }
 0x283   :  { %v499_v56 = vmax.f32 %v469_v54, 0.0  ;;  %v484_v57 = vadd.f32 %v878_v55, %v694_v44 }
 0x284   :  { %v478_v59 = vpop.f32.mrf.mxu0 }
 0x285   :  { %v479_v60 = vadd.f32 %v694_v44, %v478_v59  ;;  %917 = vmatprep.mubr.f32.mxu1 %v499_v56  ;;  %v502_v61 = vmax.f32 %v484_v57, 0.0 }
 0x286   :  { %918 = vmatmul.mubr.f32.vlgmr.msra.gmra.mxu1 %v500_v58  ;;  %v881_v62 = vpop.f32.mrf.mxu0 }
 0x287   :  { %v501_v63 = vmax.f32 %v479_v60, 0.0  ;;  %v494_v0 = vadd.f32 %v881_v62, %v694_v44 }
 0x288   :  { %v488_v1 = vpop.f32.mrf.mxu0 }
 0x289   :  { %v489_v2 = vadd.f32 %v694_v44, %v488_v1  ;;  %920 = vmatprep.mubr.f32.mxu1 %v501_v63  ;;  %v504_v3 = vmax.f32 %v494_v0, 0.0 }
 0x28a   :  { %921 = vmatmul.mubr.f32.gmra.mxu1 %v502_v61 }
 0x28b   :  { %v503_v4 = vmax.f32 %v489_v2, 0.0 }
 0x28d   :  { %923 = vmatprep.mubr.f32.mxu1 %v503_v4 }
 0x28e   :  { %924 = vmatmul.mubr.f32.gmra.mxu1 %v504_v3 }
 0x342   :  { %v916_v5 = vpop.f32.mrf.mxu0 }
 0x343   :  { %v600_v10 = vadd.f32 %v916_v5, %v695_v6 }
 0x344   :  { %v594_v7 = vpop.f32.mrf.mxu0 }
 0x345   :  { %v595_v8 = vadd.f32 %v695_v6, %v594_v7 }
 0x346   :  { %v919_v9 = vpop.f32.mrf.mxu1 }
 0x347   :  { %633 = vxpose.xlu0.b32.start [1/8] (short) (narrow) %v595_v8, 8  ;;  %v610_v14 = vadd.f32 %v919_v9, %v695_v6 }
 0x348   :  { %v604_v11 = vpop.f32.mrf.mxu1 }
 0x349   :  { %v605_v12 = vadd.f32 %v695_v6, %v604_v11 }
 0x34a   :  { %v922_v13 = vpop.f32.mrf.mxu1 }
 0x34b   :  { %634 = vxpose.xlu0.b32.cont [2/8] (short) (narrow) %v600_v10, 8  ;;  %v620_v18 = vadd.f32 %v922_v13, %v695_v6 }
 0x34c   :  { %v614_v15 = vpop.f32.mrf.mxu1 }
 0x34d   :  { %v615_v16 = vadd.f32 %v695_v6, %v614_v15 }
 0x34e   :  { %v925_v17 = vpop.f32.mrf.mxu1 }
 0x34f   :  { %635 = vxpose.xlu0.b32.cont [3/8] (short) (narrow) %v605_v12, 8  ;;  %v630_v21 = vadd.f32 %v925_v17, %v695_v6 }
 0x350   :  { %v624_v19 = vpop.f32.mrf.mxu1 }
 0x351   :  { %v625_v20 = vadd.f32 %v695_v6, %v624_v19 }
 0x353   :  { %636 = vxpose.xlu0.b32.cont [4/8] (short) (narrow) %v610_v14, 8 }
 0x357   :  { %637 = vxpose.xlu0.b32.cont [5/8] (short) (narrow) %v615_v16, 8 }
 0x35b   :  { %638 = vxpose.xlu0.b32.cont [6/8] (short) (narrow) %v620_v18, 8 }
 0x35f   :  { %639 = vxpose.xlu0.b32.cont [7/8] (short) (narrow) %v625_v20, 8 }
 0x363   :  { %640 = vxpose.xlu0.b32.end [8/8] (short) (narrow) %v630_v21, 8 }
 0x3c3   :  { %v649_v22 = vpop.trf.xlu0 }
 0x3c4   :  { %666 = vst.msk [vmem:[#allocation8] sm:$0x1] %vm665_vm2, %v649_v22 }
 0x3c5   :  { %1036 = shalt.err (!%p1033_p5)
}
 0x3c6   :  { %676 = dma.vmem_to_hbm [thread:$0]  %s674_s24, 16, %s1196_s9, [#allocation4]  }
 0x3c7   :  { %1049 = dma.done.wait [#allocation4], 16  }
 0x3c8   :  { %1050 = vsyncadd [#allocation4], 4294967280 }
 0x3c9   :  { %680 = vsyncpa [#allocation3], 1 }
 0x3ca   :  { %681 = vsyncpa [#allocation6], 1 }
 0x3cb   :  { %682 = vsyncpa [#allocation4], 1 }

</bundles_post_ra>
